<compile_context>
chip_gen: v7x
topology: tpu7x:2x2x1
jax: 0.10.0
libtpu: 0.0.40
codegen_flags: <defaults>
</compile_context>

<pallas_src>
from functools import partial as _partial

import jax
import jax.numpy as jnp
from jax.experimental import pallas as pl
from jax.experimental.pallas import tpu as pltpu


def _round_up(x, m):
    return ((x + m - 1) // m) * m


def _select_budgets():
    """(pipelined-footprint budget bytes, vmem_limit_bytes or None)."""
    kind = ""
    try:
        kind = jax.devices()[0].device_kind.lower()
    except Exception:  # pragma: no cover - budget fallback only
        pass
    if "v6" in kind:
        # v6e: 128 MiB physical VMEM -> bigger tiles + raised scoped limit.
        return 40 * 1024 * 1024, 64 * 1024 * 1024
    if "v5" in kind:
        # v5e/v5p: 128 MiB physical, but v5e's default scoped limit is only
        # 16 MiB -> raise it explicitly and keep the footprint moderate.
        return 20 * 1024 * 1024, 32 * 1024 * 1024
    # v7x / unknown: 64 MiB physical, 32 MiB default scoped -> stay under it.
    return 20 * 1024 * 1024, None


def _mil_loss_kernel(logit_ref, label_ref, out_ref, *, n_rows, tile_rows, has_tail):
    """One (TN, C) row-tile -> one lane-dense (1, 1, 128) partial-sum block."""
    x = logit_ref[...].astype(jnp.float32)   # (TN, C)
    y = label_ref[...].astype(jnp.float32)   # (TN, C)

    # Numerically-stable logsumexp pieces (lane-axis reductions).
    m = jnp.max(x, axis=-1, keepdims=True)                             # (TN, 1)
    lse = jnp.log(jnp.sum(jnp.exp(x - m), axis=-1, keepdims=True))     # (TN, 1)

    # sum(log_softmax(x) * y) = sum(x*y) - (m + lse) * sum(y)
    den = jnp.sum(y, axis=-1, keepdims=True)                           # (TN, 1)
    num = jnp.sum(x * y, axis=-1, keepdims=True) - (m + lse) * den     # (TN, 1)

    def _store(tile_sum):
        # Lane-dense store of the per-tile partial sum (no masked vst).
        out_ref[...] = jnp.full(out_ref.shape, tile_sum, dtype=out_ref.dtype)

    if has_tail:
        i = pl.program_id(0)
        last = pl.num_programs(0) - 1

        @pl.when(i == last)
        def _():
            # Only the ragged last tile pays for masking. Mask num/den BEFORE
            # the divide so OOB garbage (possibly NaN/Inf) never enters the
            # arithmetic; valid rows keep exact PyTorch semantics (a real row
            # with den == 0 still yields NaN, matching 0/0 in torch).
            row_ids = i * tile_rows + jax.lax.broadcasted_iota(
                jnp.int32, (tile_rows, 1), 0)
            valid = row_ids < n_rows
            num_m = jnp.where(valid, num, 0.0)
            den_m = jnp.where(valid, den, 1.0)
            _store(jnp.sum(num_m / den_m))

        @pl.when(i != last)
        def _():
            _store(jnp.sum(num / den))
    else:
        _store(jnp.sum(num / den))


def mil_loss(logit, label):
    """Returns (scalar_loss, dict) like the nn.Module, lazily (no host sync)."""
    n, c = logit.shape
    assert label.shape == (n, c)

    footprint_budget, vmem_limit = _select_budgets()

    # --- Tile sizing (lane-padding + dtype aware) -------------------------
    # A (tn, C) block in VMEM occupies tn * max(C, 128) * itemsize bytes.
    c_eff = max(c, 128)
    per_row_inputs = c_eff * (logit.dtype.itemsize + label.dtype.itemsize)
    # In-kernel f32 working set (casts + elementwise products), ~3 f32 rows.
    per_row_scratch = c_eff * 4 * 3
    per_row_total = 2 * per_row_inputs + per_row_scratch   # x2 = double buffer
    tn = footprint_budget // max(per_row_total, 1)
    tn = max(8, (tn // 8) * 8)

    if n <= tn:
        tn = n  # single full-array tile (full-extent block is always legal)
    else:
        # Keep >= 4 grid steps so the "parallel" axis can shard across both
        # v7x TensorCores (and stays well pipelined elsewhere).
        tn = min(tn, max(8, _round_up(pl.cdiv(n, 4), 8)))
    num_tiles = pl.cdiv(n, tn)
    has_tail = (n % tn) != 0

    kernel = _partial(_mil_loss_kernel, n_rows=n, tile_rows=tn, has_tail=has_tail)

    cost = pl.CostEstimate(
        flops=5 * n * c + 2 * n,
        transcendentals=n * c + n,
        bytes_accessed=n * c * (logit.dtype.itemsize + label.dtype.itemsize)
        + num_tiles * 128 * 4,
    )

    partials = pl.pallas_call(
        kernel,
        out_shape=jax.ShapeDtypeStruct((num_tiles, 1, 128), jnp.float32),
        grid=(num_tiles,),
        in_specs=[
            pl.BlockSpec((tn, c), lambda i: (i, 0)),
            pl.BlockSpec((tn, c), lambda i: (i, 0)),
        ],
        out_specs=pl.BlockSpec((1, 1, 128), lambda i: (i, 0, 0)),
        compiler_params=pltpu.CompilerParams(
            dimension_semantics=("parallel",),   # megacore-shardable on v7x
            vmem_limit_bytes=vmem_limit,
        ),
        cost_estimate=cost,
    )(logit, label)

    # Tiny final reduction stays in XLA and fuses into the surrounding graph.
    loss = -(jnp.sum(partials[:, 0, 0]) / n)
    return loss, {"MIL Loss": loss}

    # TODO(synk): for production shapes with C << 128, repack G=128//C rows
    # into the lane axis (reshape (N,C)->(N/G, G*C)) and do the segmented row
    # reductions with a block-diagonal ones matmul on the idle MXU; cuts VMEM
    # padding and per-useful-byte VPU/vld work ~8x at C=16.
    # TODO(synk): for very large C (>> VMEM row budget) add an inner C grid
    # axis with an online logsumexp; not needed at these class counts.


if __name__ == "__main__":
    key = jax.random.PRNGKey(0)
    k1, k2 = jax.random.split(key)

    N, C = 8, 16  # batch of 8 bags, 16 classes (matches the module's use)
    logit = jax.random.normal(k1, (N, C), dtype=jnp.float32)
    # Multi-hot labels; guarantee every row has at least one positive so
    # label.sum(-1) never divides by zero (matches typical MIL usage).
    label = (jax.random.uniform(k2, (N, C)) < 0.4).astype(jnp.float32)
    label = label.at[:, 0].set(1.0)

    loss, info = jax.jit(mil_loss)(logit, label)
    jax.block_until_ready(loss)

    # Pure-JAX reference check (same math, outside Pallas).
    scores_ref = jax.nn.log_softmax(logit, axis=-1)
    ref = -jnp.mean(jnp.sum(scores_ref * label, axis=-1) / jnp.sum(label, axis=-1))
    assert jnp.allclose(loss, ref, atol=1e-5, rtol=1e-5), (loss, ref)

    # Also exercise a shape with a ragged tail / multiple tiles at trace time
    # to cover the pl.when-gated masking path.
    N2 = 52
    logit2 = jax.random.normal(k1, (N2, C), dtype=jnp.float32)
    label2 = (jax.random.uniform(k2, (N2, C)) < 0.4).astype(jnp.float32)
    label2 = label2.at[:, 0].set(1.0)
    loss2, _ = jax.jit(mil_loss)(logit2, label2)
    jax.block_until_ready(loss2)
    scores2 = jax.nn.log_softmax(logit2, axis=-1)
    ref2 = -jnp.mean(jnp.sum(scores2 * label2, axis=-1) / jnp.sum(label2, axis=-1))
    assert jnp.allclose(loss2, ref2, atol=1e-5, rtol=1e-5), (loss2, ref2)

    print("KERNEL_OK")
</pallas_src>

<mosaic_0001>
module attributes {stable_mosaic.version = 11 : i64} {
  func.func @_mil_loss_kernel(%arg0: i32, %arg1: memref<8x16xf32, #tpu.memory_space<vmem>>, %arg2: memref<8x16xf32, #tpu.memory_space<vmem>>, %arg3: memref<1x1x128xf32, #tpu.memory_space<vmem>>) attributes {dimension_semantics = [#tpu.dimension_semantics<parallel>], iteration_bounds = array<i64: 1>, scalar_prefetch = 0 : i64, scratch_operands = 0 : i64, tpu.core_type = #tpu.core_type<tc>, window_params = [{transform_indices = @transform_0, window_bounds = array<i64: 8, 16>}, {transform_indices = @transform_1, window_bounds = array<i64: 8, 16>}, {transform_indices = @transform_2, window_bounds = array<i64: 1, 1, 128>}]} {
    %c0 = arith.constant 0 : index
    %c0_0 = arith.constant 0 : index
    %0 = vector.load %arg1[%c0, %c0_0] : memref<8x16xf32, #tpu.memory_space<vmem>>, vector<8x16xf32>
    %c0_1 = arith.constant 0 : index
    %c0_2 = arith.constant 0 : index
    %1 = vector.load %arg2[%c0_1, %c0_2] : memref<8x16xf32, #tpu.memory_space<vmem>>, vector<8x16xf32>
    %cst = arith.constant dense<0xFF800000> : vector<8xf32>
    %2 = vector.multi_reduction <maximumf>, %0, %cst [1] : vector<8x16xf32> to vector<8xf32>
    %3 = vector.shape_cast %2 : vector<8xf32> to vector<8x1xf32>
    %4 = vector.broadcast %3 : vector<8x1xf32> to vector<8x16xf32>
    %5 = arith.subf %0, %4 : vector<8x16xf32>
    %6 = math.exp %5 : vector<8x16xf32>
    %cst_3 = arith.constant dense<0.000000e+00> : vector<8xf32>
    %7 = vector.multi_reduction <add>, %6, %cst_3 [1] : vector<8x16xf32> to vector<8xf32>
    %8 = vector.shape_cast %7 : vector<8xf32> to vector<8x1xf32>
    %9 = math.log %8 : vector<8x1xf32>
    %cst_4 = arith.constant dense<0.000000e+00> : vector<8xf32>
    %10 = vector.multi_reduction <add>, %1, %cst_4 [1] : vector<8x16xf32> to vector<8xf32>
    %11 = vector.shape_cast %10 : vector<8xf32> to vector<8x1xf32>
    %12 = arith.mulf %0, %1 : vector<8x16xf32>
    %cst_5 = arith.constant dense<0.000000e+00> : vector<8xf32>
    %13 = vector.multi_reduction <add>, %12, %cst_5 [1] : vector<8x16xf32> to vector<8xf32>
    %14 = vector.shape_cast %13 : vector<8xf32> to vector<8x1xf32>
    %15 = arith.addf %3, %9 : vector<8x1xf32>
    %16 = arith.mulf %15, %11 : vector<8x1xf32>
    %17 = arith.subf %14, %16 : vector<8x1xf32>
    %18 = arith.divf %17, %11 : vector<8x1xf32>
    %19 = vector.shape_cast %18 : vector<8x1xf32> to vector<1x8x1xf32>
    %cst_6 = arith.constant dense<0.000000e+00> : vector<1xf32>
    %20 = vector.multi_reduction <add>, %19, %cst_6 [1, 2] : vector<1x8x1xf32> to vector<1xf32>
    %21 = vector.shape_cast %20 : vector<1xf32> to vector<1x1x1xf32>
    %22 = vector.extract %21[0, 0, 0] : f32 from vector<1x1x1xf32>
    %23 = vector.broadcast %22 : f32 to vector<1x1x128xf32>
    %c0_7 = arith.constant 0 : index
    %c0_8 = arith.constant 0 : index
    %c0_9 = arith.constant 0 : index
    %24 = vector.load %arg3[%c0_7, %c0_8, %c0_9] : memref<1x1x128xf32, #tpu.memory_space<vmem>>, vector<1x1x128xf32>
    tpu.vector_store %arg3[%c0_7, %c0_8, %c0_9], %23 {strides = array<i32>} : memref<1x1x128xf32, #tpu.memory_space<vmem>>, vector<1x1x128xf32>,
    return
  }
  func.func @transform_0(%arg0: i32) -> (i32, i32) {
    %c0_i32 = arith.constant 0 : i32
    %c0_i32_0 = arith.constant 0 : i32
    return %arg0, %c0_i32 : i32, i32
  }
  func.func @transform_1(%arg0: i32) -> (i32, i32) {
    %c0_i32 = arith.constant 0 : i32
    %c0_i32_0 = arith.constant 0 : i32
    return %arg0, %c0_i32 : i32, i32
  }
  func.func @transform_2(%arg0: i32) -> (i32, i32, i32) {
    %c0_i32 = arith.constant 0 : i32
    %c0_i32_0 = arith.constant 0 : i32
    %c0_i32_1 = arith.constant 0 : i32
    return %arg0, %c0_i32, %c0_i32_0 : i32, i32, i32
  }
}

</mosaic_0001>

<bundles_post_ra>
// kernel: mil_loss.1
= control target key start
LH: loop header
LB: loop body
LE: loop exit
PB: predicated region body
PF: predicated region fallthrough
CT: control target
= control target key end

     0   :  { %7 = vsyncpa [#allocation3], 0  ;;  %s182_s0 = inlined_call_operand.hbm [shape: f32[8,16], index: 0, kind: input, shape index: {}]   ;;  %s183_s1 = inlined_call_operand.hbm [shape: f32[8,16], index: 1, kind: input, shape index: {}]   ;;  %s184_s2 = inlined_call_operand.vmem [shape: f32[1,1,128], index: 2, kind: output, shape index: {}]  }
   0x1   :  { %8 = vsyncpa [#allocation5], 0  ;;  %s138_s9 = smov [#allocation2]   ;;  %s139_s11 = smov [#allocation4]  }
   0x2   :  { %s15_s10 = sshll.u32 %s138_s9, 4  ;;  %s25_s12 = sshll.u32 %s139_s11, 4  ;;  %s16_s10 = int_to_ptr.vmem [resolvable:$true] %s15_s10  ;;  %s26_s12 = int_to_ptr.vmem [resolvable:$true] %s25_s12 }
   0x3   :  { %s90_s15 = scalar_lea.hbm %s182_s0, 128 }
   0x4   :  { %p91_p0 = scmp.ne.s32.totalorder %s182_s0, %s90_s15  ;;  %p94_p1 = scmp.lt.u32.totalorder %s90_s15, %s182_s0 }
   0x6   :  { %p96_p2 = pnand %p94_p1, %p91_p0 }
   0x8   :  { %99 = shalt.err (!%p96_p2)
}
   0x9   :  { %s100_s20 = scalar_lea.vmem %s16_s10, 128  ;;  %p105_p4 = scmp.lt.s32.totalorder %s16_s10, %s16_s10 }
   0xa   :  { %p101_p3 = scmp.ne.s32.totalorder %s16_s10, %s100_s20  ;;  %p106_p5 = scmp.lt.s32.totalorder %s100_s20, %s100_s20 }
   0xc   :  { %p107_p6 = por %p106_p5, %p105_p4 }
   0xe   :  { %p108_p7 = pnand %p107_p6, %p101_p3 }
  0x10   :  { %111 = shalt.err (!%p108_p7)
}
  0x11   :  { %18 = dma.hbm_to_vmem [thread:$0]  %s182_s0, 128, %s16_s10, [#allocation3]  }
  0x12   :  { %s112_s25 = scalar_lea.hbm %s183_s1, 128 }
  0x13   :  { %p113_p8 = scmp.ne.s32.totalorder %s183_s1, %s112_s25  ;;  %p116_p9 = scmp.lt.u32.totalorder %s112_s25, %s183_s1 }
  0x15   :  { %p118_p10 = pnand %p116_p9, %p113_p8 }
  0x17   :  { %121 = shalt.err (!%p118_p10)
}
  0x18   :  { %s122_s30 = scalar_lea.vmem %s26_s12, 128  ;;  %p127_p12 = scmp.lt.s32.totalorder %s26_s12, %s26_s12 }
  0x19   :  { %p123_p11 = scmp.ne.s32.totalorder %s26_s12, %s122_s30  ;;  %p128_p13 = scmp.lt.s32.totalorder %s122_s30, %s122_s30 }
  0x1b   :  { %p129_p0 = por %p128_p13, %p127_p12 }
  0x1d   :  { %p130_p1 = pnand %p129_p0, %p123_p11 }
  0x1f   :  { %133 = shalt.err (!%p130_p1)
}
  0x20   :  { %28 = dma.hbm_to_vmem [thread:$0]  %s183_s1, 128, %s26_s12, [#allocation5]  }
  0x21   :  { %134 = dma.done.wait [#allocation3], 128  }
  0x22   :  { %135 = vsyncadd [#allocation3], 4294967168 }
  0x23   :  { %136 = dma.done.wait [#allocation5], 128  }
  0x24   :  { %137 = vsyncadd [#allocation5], 4294967168  ;;  %vm37_vm0 = vcmask 130048   ;;  %v35_v0 = vld [vmem:[#allocation2] sm:$0xff]  ;;  %v36_v2 = vld [vmem:[#allocation4] sm:$0xff]  ;;  %vm61_vm1 = vcmask 7168  }
  0x25   :  { %v38_v1 = vsel %vm37_vm0, %v35_v0, -inf  ;;  %v49_v3 = vsel %vm37_vm0, %v36_v2, 0.0  ;;  %v52_v4 = vmul.f32 %v36_v2, %v35_v0 }
  0x26   :  { %39 = vmax.xlane.f32.xlu0 %v38_v1  ;;  %50 = vadd.xlane.f32.xlu1 %v49_v3 }
  0x27   :  { %v53_v5 = vsel %vm37_vm0, %v52_v4, 0.0 }
  0x2a   :  { %54 = vadd.xlane.f32.xlu1 %v53_v5 }
  0xb3   :  { %v40_v6 = vpop.xlane.xlu0 %39  ;;  %v51_v12 = vpop.xlane.xlu1 %50 }
  0xb4   :  { %v41_v7 = vsub.f32 %v35_v0, %v40_v6 }
  0xb6   :  { %v42_v8 = vmul.f32 1.442695, %v41_v7 }
  0xb7   :  { %v55_v16 = vpop.xlane.xlu1 %54 }
  0xb8   :  { %84 = vpow2.f32 %v42_v8 }
  0xc2   :  { %v85_v9 = vpop.eup %84 }
  0xc3   :  { %v44_v10 = vsel %vm37_vm0, %v85_v9, 0.0 }
  0xc4   :  { %45 = vadd.xlane.f32.xlu0 %v44_v10 }
 0x151   :  { %v46_v11 = vpop.xlane.xlu0 %45 }
 0x152   :  { %86 = vlog2.f32 %v46_v11 }
 0x153   :  { %88 = vrcp.f32 %v51_v12 }
 0x15c   :  { %v87_v13 = vpop.eup %86 }
 0x15d   :  { %v48_v14 = vmul.f32 0.6931472, %v87_v13  ;;  %v89_v18 = vpop.eup %88 }
 0x15f   :  { %v56_v15 = vadd.f32 %v48_v14, %v40_v6 }
 0x161   :  { %v57_v17 = vmul.f32 %v56_v15, %v51_v12 }
 0x163   :  { %v58_v19 = vsub.f32 %v55_v16, %v57_v17 }
 0x165   :  { %v60_v20 = vmul.f32 %v89_v18, %v58_v19 }
 0x167   :  { %v62_v21 = vsel %vm61_vm1, %v60_v20, 0.0 }
 0x168   :  { %63 = vadd.xlane.f32.xlu0 %v62_v21 }
 0x1f5   :  { %v64_v22 = vpop.xlane.xlu0 %63 }
 0x1f6   :  { %v65_v23 = vrot.slane %v64_v22, 4 }
 0x1f8   :  { %v66_v24 = vadd.f32 %v65_v23, %v64_v22 }
 0x1fa   :  { %v67_v25 = vrot.slane %v66_v24, 2 }
 0x1fc   :  { %v68_v26 = vadd.f32 %v67_v25, %v66_v24 }
 0x1fe   :  { %v69_v27 = vrot.slane %v68_v26, 1 }
 0x200   :  { %v70_v28 = vadd.f32 %v69_v27, %v68_v26 }
 0x202   :  { %80 = vpush %v70_v28 }
 0x233   :  { %s81_s1 = spop %80 }
 0x234   :  { %v72_v29 = vstv %s81_s1 }
 0x235   :  { %73 = vst [vmem:[%s184_s2] sm:$0x1] %v72_v29 }
 0x236   :  { %78 = vsyncpa [#allocation3], 1 }
 0x237   :  { %79 = vsyncpa [#allocation5], 1 }

</bundles_post_ra>
